<compile_context>
chip_gen: v7x
topology: tpu7x:2x2x1
jax: 0.10.0
libtpu: 0.0.40
codegen_flags: <defaults>
</compile_context>

<pallas_src>
import jax
import jax.numpy as jnp
from jax.experimental import pallas as pl
from jax.experimental.pallas import tpu as pltpu

VMEM = pl.BlockSpec(memory_space=pltpu.MemorySpace.VMEM)


# ------------------------- fused forward kernel -------------------------

def _make_fused_kernel(*, B, K, blocks, lin_dims, Lf, Cf):
    """Build the fused forward kernel.

    blocks:   tuple of (L, Cin, Cfeat) per conv block (two convs, then pool /2).
    lin_dims: tuple of (Din, Dout) per Linear layer.
    Activations are kept as 2-D (B*L, C) f32 values with rows in
    (batch, position) order and channels on lanes.
    """
    n_conv = 2 * len(blocks)
    n_blk = len(blocks)
    n_lin = len(lin_dims)
    halo = K // 2

    def kernel(*refs):
        i = 0
        x_ref = refs[i]; i += 1
        conv_w = refs[i:i + n_conv]; i += n_conv
        conv_b = refs[i:i + n_conv]; i += n_conv
        lin_w = refs[i:i + n_lin]; i += n_lin
        lin_b = refs[i:i + n_lin]; i += n_lin
        o_ref = refs[i]; i += 1
        col_scr = refs[i:i + n_conv]; i += n_conv     # im2col scratch per conv
        pool_scr = refs[i:i + n_blk]; i += n_blk      # pre-pool buffer per block
        flat_scr = refs[i]; i += 1                    # head-input buffer

        x = x_ref[...]                                # (B*L0, Cin0) f32
        ci = 0
        # NOTE: static Python unroll is fine here (2 blocks x 2 convs, K=3, B=2);
        # shapes differ per layer so a fori_loop / grid axis is not applicable.
        for bi, (L, cin_blk, feat) in enumerate(blocks):
            for li in range(2):
                cin = cin_blk if li == 0 else feat
                w_ref, b_ref, scr = conv_w[ci], conv_b[ci], col_scr[ci]
                # ---- im2col into VMEM scratch; memset provides the zero halo ----
                scr[...] = jnp.zeros(scr.shape, jnp.float32)
                for k in range(K):
                    lo = max(0, halo - k)             # output rows this tap touches
                    hi = min(L, L + halo - k)
                    plo = lo + k - halo               # matching input rows
                    phi = hi + k - halo
                    for b in range(B):
                        scr[b * L + lo:b * L + hi, k * cin:(k + 1) * cin] = (
                            x[b * L + plo:b * L + phi, :])
                # ---- Conv1d == one MXU matmul: (B*L, K*Cin) @ (K*Cin, Cout) ----
                y = jnp.dot(scr[...].astype(jnp.bfloat16), w_ref[...],
                            preferred_element_type=jnp.float32)
                # bias (with folded eval-mode BatchNorm) + ReLU on the VPU
                x = jnp.maximum(y + b_ref[...], 0.0)
                ci += 1
            # ---- MaxPool1d(2): pairwise max of adjacent rows (L is even, so
            #      row pairs never straddle a batch boundary) ----
            ps = pool_scr[bi]
            ps[...] = x
            half = (B * L) // 2
            x = jnp.maximum(ps[pl.ds(0, half, 2), :], ps[pl.ds(1, half, 2), :])

        # ---- flatten (implicit) + Linear/ReLU head ----
        flat_scr[...] = x                             # (B*Lf, Cf)
        h = None
        for j, (_din, dout) in enumerate(lin_dims):
            w_ref, b_ref = lin_w[j], lin_b[j]
            if j == 0:
                # First Linear consumes the conv output position-by-position; its
                # weight was permuted at init to torch's channel-major flatten
                # order, so no activation transpose/reshape is needed.
                acc = jnp.zeros((B, dout), jnp.float32)
                for l in range(Lf):
                    rows = flat_scr[pl.ds(l, B, Lf), :]          # (B, Cf)
                    acc = acc + jnp.dot(rows.astype(jnp.bfloat16), w_ref[l],
                                        preferred_element_type=jnp.float32)
            else:
                acc = jnp.dot(h.astype(jnp.bfloat16), w_ref[...],
                              preferred_element_type=jnp.float32)
            h = jnp.maximum(acc + b_ref[...], 0.0)
        o_ref[...] = h

    return kernel


# ------------------------- wrapper -------------------------

def cnn_forward(params, x_ncl):
    """x_ncl: (B, C, L) float array in PyTorch NCL layout -> (B, Output[-1])."""
    meta = params["meta"]
    conv, lins = params["conv"], params["linear"]
    K, L0 = meta["K"], meta["L0"]
    blocks, lin_dims = meta["blocks"], meta["lin_dims"]
    Lf, Cf = meta["Lf"], meta["Cf"]
    B, Cin0, L_in = x_ncl.shape
    assert L_in == L0 and Cin0 == blocks[0][1]

    # One tiny layout op (B*C*L*4 bytes) outside the kernel: NCL -> (B*L, C) rows
    # in (batch, position) order.  The expensive pre-flatten transpose of the
    # reference model is eliminated by permuting the first Linear weight at init.
    x2d = jnp.transpose(x_ncl, (0, 2, 1)).reshape(B * L0, Cin0).astype(jnp.float32)

    kernel = _make_fused_kernel(B=B, K=K, blocks=blocks, lin_dims=lin_dims,
                                Lf=Lf, Cf=Cf)

    # VMEM scratch: im2col buffer per conv, pre-pool buffer per block, head input.
    scratch = []
    for (L, cin_blk, feat) in blocks:
        scratch.append(pltpu.VMEM((B * L, K * cin_blk), jnp.float32))
        scratch.append(pltpu.VMEM((B * L, K * feat), jnp.float32))
    for (L, _cin, feat) in blocks:
        scratch.append(pltpu.VMEM((B * L, feat), jnp.float32))
    scratch.append(pltpu.VMEM((B * Lf, Cf), jnp.float32))

    inputs = ([x2d]
              + [c["w"] for c in conv] + [c["b"] for c in conv]
              + [p["w"] for p in lins] + [p["b"] for p in lins])

    # TODO(synk): if the config is ever scaled up (large Data Length / wide
    # features), switch to tiled BlockSpecs with a grid and
    # dimension_semantics=("parallel",...) so v7x's second TensorCore is used
    # and tiles stay within its 64 MiB VMEM budget.
    return pl.pallas_call(
        kernel,
        out_shape=jax.ShapeDtypeStruct((B, lin_dims[-1][1]), jnp.float32),
        in_specs=[VMEM] * len(inputs),
        out_specs=VMEM,
        scratch_shapes=scratch,
    )(*inputs)


# ------------------------- parameter init (deterministic) -------------------------

def _uniform(key, shape, bound):
    return jax.random.uniform(key, shape, jnp.float32, -bound, bound)


def init_params(key, config):
    """PyTorch-style init with eval-BatchNorm folded and weights pre-arranged
    for the fused kernel (conv: (K*Cin, Cout); first Linear: (Lf, Cf, Dout))."""
    K = config["kernel size"]
    assert K % 2 == 1, "padding=K//2 preserves length only for odd kernels"
    eps = 1e-5
    bn_scale = (1.0 + eps) ** -0.5     # gamma=1, running_var=1 (eval defaults)
    bn_shift = 0.0                     # beta=0,  running_mean=0

    cin = 4 + config["n order differences"]
    L = config["Data Length"]
    blocks = []
    conv_layers = []
    for feat in config["CNN features"]:
        blocks.append((L, cin, feat))
        for (ci_, co_) in ((cin, feat), (feat, feat)):
            key, kw, kb = jax.random.split(key, 3)
            bound = 1.0 / float(ci_ * K) ** 0.5
            w_torch = _uniform(kw, (co_, ci_, K), bound)     # PyTorch Conv1d layout
            bias = _uniform(kb, (co_,), bound)
            # fold eval-mode BatchNorm1d into the conv: w *= scale, b = b*scale+shift
            w = jnp.transpose(w_torch, (2, 1, 0)).reshape(K * ci_, co_) * bn_scale
            b = bias * bn_scale + bn_shift
            conv_layers.append(dict(w=w.astype(jnp.bfloat16),
                                    b=b.reshape(1, co_).astype(jnp.float32)))
        cin = feat
        L //= 2
    Lf, Cf = L, cin

    last = Lf * Cf
    linears = []
    lin_dims = []
    for idx, feat in enumerate(config["Output features"]):
        key, kw, kb = jax.random.split(key, 3)
        bound = 1.0 / float(last) ** 0.5
        w_torch = _uniform(kw, (feat, last), bound)          # PyTorch Linear (out, in)
        bias = _uniform(kb, (feat,), bound)
        if idx == 0:
            # torch.flatten on (B, C, L) uses index c*Lf + l; store the weight as
            # (Lf, Cf, Dout) so the kernel consumes (position, channel) directly.
            w = jnp.transpose(w_torch.reshape(feat, Cf, Lf), (2, 1, 0))
        else:
            w = jnp.transpose(w_torch)                       # (Din, Dout)
        linears.append(dict(w=w.astype(jnp.bfloat16),
                            b=bias.reshape(1, feat).astype(jnp.float32)))
        lin_dims.append((last, feat))
        last = feat

    meta = dict(K=K, L0=config["Data Length"], blocks=tuple(blocks),
                lin_dims=tuple(lin_dims), Lf=Lf, Cf=Cf)
    return dict(conv=conv_layers, linear=linears, meta=meta)


# ------------------------- main -------------------------

if __name__ == "__main__":
    config = {
        "kernel size": 3,
        "Dropout": 0.2,
        "Data Length": 16,
        "device": "tpu",
        "n order differences": 0,      # -> 4 input channels
        "CNN features": [8, 16],
        "Output features": [32, 10],
    }
    key = jax.random.PRNGKey(0)
    kparams, kx = jax.random.split(key)
    params = init_params(kparams, config)

    x = jax.random.normal(kx, (2, 4, config["Data Length"]), jnp.float32)  # (B, C, L)
    forward = jax.jit(lambda inp: cnn_forward(params, inp))
    out = jax.block_until_ready(forward(x))
    assert out.shape == (2, config["Output features"][-1]), out.shape
    assert bool(jnp.all(jnp.isfinite(out)))
    print("KERNEL_OK")
</pallas_src>

<mosaic_0001>
module attributes {stable_mosaic.version = 11 : i64} {
  func.func @kernel(%arg0: memref<32x4xf32, #tpu.memory_space<vmem>>, %arg1: memref<12x8xbf16, #tpu.memory_space<vmem>>, %arg2: memref<24x8xbf16, #tpu.memory_space<vmem>>, %arg3: memref<24x16xbf16, #tpu.memory_space<vmem>>, %arg4: memref<48x16xbf16, #tpu.memory_space<vmem>>, %arg5: memref<1x8xf32, #tpu.memory_space<vmem>>, %arg6: memref<1x8xf32, #tpu.memory_space<vmem>>, %arg7: memref<1x16xf32, #tpu.memory_space<vmem>>, %arg8: memref<1x16xf32, #tpu.memory_space<vmem>>, %arg9: memref<4x16x32xbf16, #tpu.memory_space<vmem>>, %arg10: memref<32x10xbf16, #tpu.memory_space<vmem>>, %arg11: memref<1x32xf32, #tpu.memory_space<vmem>>, %arg12: memref<1x10xf32, #tpu.memory_space<vmem>>, %arg13: memref<2x10xf32, #tpu.memory_space<vmem>>, %arg14: memref<32x12xf32, #tpu.memory_space<vmem>>, %arg15: memref<32x24xf32, #tpu.memory_space<vmem>>, %arg16: memref<16x24xf32, #tpu.memory_space<vmem>>, %arg17: memref<16x48xf32, #tpu.memory_space<vmem>>, %arg18: memref<32x8xf32, #tpu.memory_space<vmem>>, %arg19: memref<16x16xf32, #tpu.memory_space<vmem>>, %arg20: memref<8x16xf32, #tpu.memory_space<vmem>>) attributes {dimension_semantics = [], scalar_prefetch = 0 : i64, scratch_operands = 7 : i64, tpu.core_type = #tpu.core_type<tc>} {
    %c0 = arith.constant 0 : index
    %c0_0 = arith.constant 0 : index
    %0 = vector.load %arg0[%c0, %c0_0] : memref<32x4xf32, #tpu.memory_space<vmem>>, vector<32x4xf32>
    %cst = arith.constant 0.000000e+00 : f32
    %1 = vector.broadcast %cst : f32 to vector<32x12xf32>
    %c0_1 = arith.constant 0 : index
    %c0_2 = arith.constant 0 : index
    %2 = vector.load %arg14[%c0_1, %c0_2] : memref<32x12xf32, #tpu.memory_space<vmem>>, vector<32x12xf32>
    tpu.vector_store %arg14[%c0_1, %c0_2], %1 {strides = array<i32>} : memref<32x12xf32, #tpu.memory_space<vmem>>, vector<32x12xf32>,
    %3 = vector.extract_strided_slice %0 {offsets = [0, 0], sizes = [15, 4], strides = [1, 1]} : vector<32x4xf32> to vector<15x4xf32>
    %c1 = arith.constant 1 : index
    %c0_3 = arith.constant 0 : index
    %4 = vector.load %arg14[%c1, %c0_3] : memref<32x12xf32, #tpu.memory_space<vmem>>, vector<15x4xf32>
    tpu.vector_store %arg14[%c1, %c0_3], %3 {strides = array<i32>} : memref<32x12xf32, #tpu.memory_space<vmem>>, vector<15x4xf32>,
    %5 = vector.extract_strided_slice %0 {offsets = [16, 0], sizes = [15, 4], strides = [1, 1]} : vector<32x4xf32> to vector<15x4xf32>
    %c17 = arith.constant 17 : index
    %c0_4 = arith.constant 0 : index
    %6 = vector.load %arg14[%c17, %c0_4] : memref<32x12xf32, #tpu.memory_space<vmem>>, vector<15x4xf32>
    tpu.vector_store %arg14[%c17, %c0_4], %5 {strides = array<i32>} : memref<32x12xf32, #tpu.memory_space<vmem>>, vector<15x4xf32>,
    %7 = vector.extract_strided_slice %0 {offsets = [0, 0], sizes = [16, 4], strides = [1, 1]} : vector<32x4xf32> to vector<16x4xf32>
    %c0_5 = arith.constant 0 : index
    %c4 = arith.constant 4 : index
    %8 = vector.load %arg14[%c0_5, %c4] : memref<32x12xf32, #tpu.memory_space<vmem>>, vector<16x4xf32>
    tpu.vector_store %arg14[%c0_5, %c4], %7 {strides = array<i32>} : memref<32x12xf32, #tpu.memory_space<vmem>>, vector<16x4xf32>,
    %9 = vector.extract_strided_slice %0 {offsets = [16, 0], sizes = [16, 4], strides = [1, 1]} : vector<32x4xf32> to vector<16x4xf32>
    %c16 = arith.constant 16 : index
    %c4_6 = arith.constant 4 : index
    %10 = vector.load %arg14[%c16, %c4_6] : memref<32x12xf32, #tpu.memory_space<vmem>>, vector<16x4xf32>
    tpu.vector_store %arg14[%c16, %c4_6], %9 {strides = array<i32>} : memref<32x12xf32, #tpu.memory_space<vmem>>, vector<16x4xf32>,
    %11 = vector.extract_strided_slice %0 {offsets = [1, 0], sizes = [15, 4], strides = [1, 1]} : vector<32x4xf32> to vector<15x4xf32>
    %c0_7 = arith.constant 0 : index
    %c8 = arith.constant 8 : index
    %12 = vector.load %arg14[%c0_7, %c8] : memref<32x12xf32, #tpu.memory_space<vmem>>, vector<15x4xf32>
    tpu.vector_store %arg14[%c0_7, %c8], %11 {strides = array<i32>} : memref<32x12xf32, #tpu.memory_space<vmem>>, vector<15x4xf32>,
    %13 = vector.extract_strided_slice %0 {offsets = [17, 0], sizes = [15, 4], strides = [1, 1]} : vector<32x4xf32> to vector<15x4xf32>
    %c16_8 = arith.constant 16 : index
    %c8_9 = arith.constant 8 : index
    %14 = vector.load %arg14[%c16_8, %c8_9] : memref<32x12xf32, #tpu.memory_space<vmem>>, vector<15x4xf32>
    tpu.vector_store %arg14[%c16_8, %c8_9], %13 {strides = array<i32>} : memref<32x12xf32, #tpu.memory_space<vmem>>, vector<15x4xf32>,
    %c0_10 = arith.constant 0 : index
    %c0_11 = arith.constant 0 : index
    %15 = vector.load %arg14[%c0_10, %c0_11] : memref<32x12xf32, #tpu.memory_space<vmem>>, vector<32x12xf32>
    %16 = arith.truncf %15 : vector<32x12xf32> to vector<32x12xbf16>
    %c0_12 = arith.constant 0 : index
    %c0_13 = arith.constant 0 : index
    %17 = vector.load %arg1[%c0_12, %c0_13] : memref<12x8xbf16, #tpu.memory_space<vmem>>, vector<12x8xbf16>
    %cst_14 = arith.constant dense<0.000000e+00> : vector<32x8xf32>
    %18 = tpu.matmul %16, %17, %cst_14 {dimension_numbers = #tpu.dot_dimension_numbers<[1], [0], [0], [1], [0, 0, 1, 1], [], []>} : vector<32x12xbf16>, vector<12x8xbf16>, vector<32x8xf32> -> vector<32x8xf32>
    %c0_15 = arith.constant 0 : index
    %c0_16 = arith.constant 0 : index
    %19 = vector.load %arg5[%c0_15, %c0_16] : memref<1x8xf32, #tpu.memory_space<vmem>>, vector<1x8xf32>
    %20 = vector.broadcast %19 : vector<1x8xf32> to vector<32x8xf32>
    %21 = arith.addf %18, %20 : vector<32x8xf32>
    %cst_17 = arith.constant 0.000000e+00 : f32
    %22 = vector.broadcast %cst_17 : f32 to vector<32x8xf32>
    %23 = arith.maximumf %21, %22 : vector<32x8xf32>
    %cst_18 = arith.constant 0.000000e+00 : f32
    %24 = vector.broadcast %cst_18 : f32 to vector<32x24xf32>
    %c0_19 = arith.constant 0 : index
    %c0_20 = arith.constant 0 : index
    %25 = vector.load %arg15[%c0_19, %c0_20] : memref<32x24xf32, #tpu.memory_space<vmem>>, vector<32x24xf32>
    tpu.vector_store %arg15[%c0_19, %c0_20], %24 {strides = array<i32>} : memref<32x24xf32, #tpu.memory_space<vmem>>, vector<32x24xf32>,
    %26 = vector.extract_strided_slice %23 {offsets = [0, 0], sizes = [15, 8], strides = [1, 1]} : vector<32x8xf32> to vector<15x8xf32>
    %c1_21 = arith.constant 1 : index
    %c0_22 = arith.constant 0 : index
    %27 = vector.load %arg15[%c1_21, %c0_22] : memref<32x24xf32, #tpu.memory_space<vmem>>, vector<15x8xf32>
    tpu.vector_store %arg15[%c1_21, %c0_22], %26 {strides = array<i32>} : memref<32x24xf32, #tpu.memory_space<vmem>>, vector<15x8xf32>,
    %28 = vector.extract_strided_slice %23 {offsets = [16, 0], sizes = [15, 8], strides = [1, 1]} : vector<32x8xf32> to vector<15x8xf32>
    %c17_23 = arith.constant 17 : index
    %c0_24 = arith.constant 0 : index
    %29 = vector.load %arg15[%c17_23, %c0_24] : memref<32x24xf32, #tpu.memory_space<vmem>>, vector<15x8xf32>
    tpu.vector_store %arg15[%c17_23, %c0_24], %28 {strides = array<i32>} : memref<32x24xf32, #tpu.memory_space<vmem>>, vector<15x8xf32>,
    %30 = vector.extract_strided_slice %23 {offsets = [0, 0], sizes = [16, 8], strides = [1, 1]} : vector<32x8xf32> to vector<16x8xf32>
    %c0_25 = arith.constant 0 : index
    %c8_26 = arith.constant 8 : index
    %31 = vector.load %arg15[%c0_25, %c8_26] : memref<32x24xf32, #tpu.memory_space<vmem>>, vector<16x8xf32>
    tpu.vector_store %arg15[%c0_25, %c8_26], %30 {strides = array<i32>} : memref<32x24xf32, #tpu.memory_space<vmem>>, vector<16x8xf32>,
    %32 = vector.extract_strided_slice %23 {offsets = [16, 0], sizes = [16, 8], strides = [1, 1]} : vector<32x8xf32> to vector<16x8xf32>
    %c16_27 = arith.constant 16 : index
    %c8_28 = arith.constant 8 : index
    %33 = vector.load %arg15[%c16_27, %c8_28] : memref<32x24xf32, #tpu.memory_space<vmem>>, vector<16x8xf32>
    tpu.vector_store %arg15[%c16_27, %c8_28], %32 {strides = array<i32>} : memref<32x24xf32, #tpu.memory_space<vmem>>, vector<16x8xf32>,
    %34 = vector.extract_strided_slice %23 {offsets = [1, 0], sizes = [15, 8], strides = [1, 1]} : vector<32x8xf32> to vector<15x8xf32>
    %c0_29 = arith.constant 0 : index
    %c16_30 = arith.constant 16 : index
    %35 = vector.load %arg15[%c0_29, %c16_30] : memref<32x24xf32, #tpu.memory_space<vmem>>, vector<15x8xf32>
    tpu.vector_store %arg15[%c0_29, %c16_30], %34 {strides = array<i32>} : memref<32x24xf32, #tpu.memory_space<vmem>>, vector<15x8xf32>,
    %36 = vector.extract_strided_slice %23 {offsets = [17, 0], sizes = [15, 8], strides = [1, 1]} : vector<32x8xf32> to vector<15x8xf32>
    %c16_31 = arith.constant 16 : index
    %c16_32 = arith.constant 16 : index
    %37 = vector.load %arg15[%c16_31, %c16_32] : memref<32x24xf32, #tpu.memory_space<vmem>>, vector<15x8xf32>
    tpu.vector_store %arg15[%c16_31, %c16_32], %36 {strides = array<i32>} : memref<32x24xf32, #tpu.memory_space<vmem>>, vector<15x8xf32>,
    %c0_33 = arith.constant 0 : index
    %c0_34 = arith.constant 0 : index
    %38 = vector.load %arg15[%c0_33, %c0_34] : memref<32x24xf32, #tpu.memory_space<vmem>>, vector<32x24xf32>
    %39 = arith.truncf %38 : vector<32x24xf32> to vector<32x24xbf16>
    %c0_35 = arith.constant 0 : index
    %c0_36 = arith.constant 0 : index
    %40 = vector.load %arg2[%c0_35, %c0_36] : memref<24x8xbf16, #tpu.memory_space<vmem>>, vector<24x8xbf16>
    %cst_37 = arith.constant dense<0.000000e+00> : vector<32x8xf32>
    %41 = tpu.matmul %39, %40, %cst_37 {dimension_numbers = #tpu.dot_dimension_numbers<[1], [0], [0], [1], [0, 0, 1, 1], [], []>} : vector<32x24xbf16>, vector<24x8xbf16>, vector<32x8xf32> -> vector<32x8xf32>
    %c0_38 = arith.constant 0 : index
    %c0_39 = arith.constant 0 : index
    %42 = vector.load %arg6[%c0_38, %c0_39] : memref<1x8xf32, #tpu.memory_space<vmem>>, vector<1x8xf32>
    %43 = vector.broadcast %42 : vector<1x8xf32> to vector<32x8xf32>
    %44 = arith.addf %41, %43 : vector<32x8xf32>
    %cst_40 = arith.constant 0.000000e+00 : f32
    %45 = vector.broadcast %cst_40 : f32 to vector<32x8xf32>
    %46 = arith.maximumf %44, %45 : vector<32x8xf32>
    %c0_41 = arith.constant 0 : index
    %c0_42 = arith.constant 0 : index
    %47 = vector.load %arg18[%c0_41, %c0_42] : memref<32x8xf32, #tpu.memory_space<vmem>>, vector<32x8xf32>
    tpu.vector_store %arg18[%c0_41, %c0_42], %46 {strides = array<i32>} : memref<32x8xf32, #tpu.memory_space<vmem>>, vector<32x8xf32>,
    %c0_43 = arith.constant 0 : index
    %c0_44 = arith.constant 0 : index
    %48 = tpu.strided_load %arg18[%c0_43, %c0_44] {strides = array<i32: 2, 1>} : memref<32x8xf32, #tpu.memory_space<vmem>>, vector<16x8xf32>
    %c1_45 = arith.constant 1 : index
    %c0_46 = arith.constant 0 : index
    %49 = tpu.strided_load %arg18[%c1_45, %c0_46] {strides = array<i32: 2, 1>} : memref<32x8xf32, #tpu.memory_space<vmem>>, vector<16x8xf32>
    %50 = arith.maximumf %48, %49 : vector<16x8xf32>
    %cst_47 = arith.constant 0.000000e+00 : f32
    %51 = vector.broadcast %cst_47 : f32 to vector<16x24xf32>
    %c0_48 = arith.constant 0 : index
    %c0_49 = arith.constant 0 : index
    %52 = vector.load %arg16[%c0_48, %c0_49] : memref<16x24xf32, #tpu.memory_space<vmem>>, vector<16x24xf32>
    tpu.vector_store %arg16[%c0_48, %c0_49], %51 {strides = array<i32>} : memref<16x24xf32, #tpu.memory_space<vmem>>, vector<16x24xf32>,
    %53 = vector.extract_strided_slice %50 {offsets = [0, 0], sizes = [7, 8], strides = [1, 1]} : vector<16x8xf32> to vector<7x8xf32>
    %c1_50 = arith.constant 1 : index
    %c0_51 = arith.constant 0 : index
    %54 = vector.load %arg16[%c1_50, %c0_51] : memref<16x24xf32, #tpu.memory_space<vmem>>, vector<7x8xf32>
    tpu.vector_store %arg16[%c1_50, %c0_51], %53 {strides = array<i32>} : memref<16x24xf32, #tpu.memory_space<vmem>>, vector<7x8xf32>,
    %55 = vector.extract_strided_slice %50 {offsets = [8, 0], sizes = [7, 8], strides = [1, 1]} : vector<16x8xf32> to vector<7x8xf32>
    %c9 = arith.constant 9 : index
    %c0_52 = arith.constant 0 : index
    %56 = vector.load %arg16[%c9, %c0_52] : memref<16x24xf32, #tpu.memory_space<vmem>>, vector<7x8xf32>
    tpu.vector_store %arg16[%c9, %c0_52], %55 {strides = array<i32>} : memref<16x24xf32, #tpu.memory_space<vmem>>, vector<7x8xf32>,
    %57 = vector.extract_strided_slice %50 {offsets = [0, 0], sizes = [8, 8], strides = [1, 1]} : vector<16x8xf32> to vector<8x8xf32>
    %c0_53 = arith.constant 0 : index
    %c8_54 = arith.constant 8 : index
    %58 = vector.load %arg16[%c0_53, %c8_54] : memref<16x24xf32, #tpu.memory_space<vmem>>, vector<8x8xf32>
    tpu.vector_store %arg16[%c0_53, %c8_54], %57 {strides = array<i32>} : memref<16x24xf32, #tpu.memory_space<vmem>>, vector<8x8xf32>,
    %59 = vector.extract_strided_slice %50 {offsets = [8, 0], sizes = [8, 8], strides = [1, 1]} : vector<16x8xf32> to vector<8x8xf32>
    %c8_55 = arith.constant 8 : index
    %c8_56 = arith.constant 8 : index
    %60 = vector.load %arg16[%c8_55, %c8_56] : memref<16x24xf32, #tpu.memory_space<vmem>>, vector<8x8xf32>
    tpu.vector_store %arg16[%c8_55, %c8_56], %59 {strides = array<i32>} : memref<16x24xf32, #tpu.memory_space<vmem>>, vector<8x8xf32>,
    %61 = vector.extract_strided_slice %50 {offsets = [1, 0], sizes = [7, 8], strides = [1, 1]} : vector<16x8xf32> to vector<7x8xf32>
    %c0_57 = arith.constant 0 : index
    %c16_58 = arith.constant 16 : index
    %62 = vector.load %arg16[%c0_57, %c16_58] : memref<16x24xf32, #tpu.memory_space<vmem>>, vector<7x8xf32>
    tpu.vector_store %arg16[%c0_57, %c16_58], %61 {strides = array<i32>} : memref<16x24xf32, #tpu.memory_space<vmem>>, vector<7x8xf32>,
    %63 = vector.extract_strided_slice %50 {offsets = [9, 0], sizes = [7, 8], strides = [1, 1]} : vector<16x8xf32> to vector<7x8xf32>
    %c8_59 = arith.constant 8 : index
    %c16_60 = arith.constant 16 : index
    %64 = vector.load %arg16[%c8_59, %c16_60] : memref<16x24xf32, #tpu.memory_space<vmem>>, vector<7x8xf32>
    tpu.vector_store %arg16[%c8_59, %c16_60], %63 {strides = array<i32>} : memref<16x24xf32, #tpu.memory_space<vmem>>, vector<7x8xf32>,
    %c0_61 = arith.constant 0 : index
    %c0_62 = arith.constant 0 : index
    %65 = vector.load %arg16[%c0_61, %c0_62] : memref<16x24xf32, #tpu.memory_space<vmem>>, vector<16x24xf32>
    %66 = arith.truncf %65 : vector<16x24xf32> to vector<16x24xbf16>
    %c0_63 = arith.constant 0 : index
    %c0_64 = arith.constant 0 : index
    %67 = vector.load %arg3[%c0_63, %c0_64] : memref<24x16xbf16, #tpu.memory_space<vmem>>, vector<24x16xbf16>
    %cst_65 = arith.constant dense<0.000000e+00> : vector<16x16xf32>
    %68 = tpu.matmul %66, %67, %cst_65 {dimension_numbers = #tpu.dot_dimension_numbers<[1], [0], [0], [1], [0, 0, 1, 1], [], []>} : vector<16x24xbf16>, vector<24x16xbf16>, vector<16x16xf32> -> vector<16x16xf32>
    %c0_66 = arith.constant 0 : index
    %c0_67 = arith.constant 0 : index
    %69 = vector.load %arg7[%c0_66, %c0_67] : memref<1x16xf32, #tpu.memory_space<vmem>>, vector<1x16xf32>
    %70 = vector.broadcast %69 : vector<1x16xf32> to vector<16x16xf32>
    %71 = arith.addf %68, %70 : vector<16x16xf32>
    %cst_68 = arith.constant 0.000000e+00 : f32
    %72 = vector.broadcast %cst_68 : f32 to vector<16x16xf32>
    %73 = arith.maximumf %71, %72 : vector<16x16xf32>
    %cst_69 = arith.constant 0.000000e+00 : f32
    %74 = vector.broadcast %cst_69 : f32 to vector<16x48xf32>
    %c0_70 = arith.constant 0 : index
    %c0_71 = arith.constant 0 : index
    %75 = vector.load %arg17[%c0_70, %c0_71] : memref<16x48xf32, #tpu.memory_space<vmem>>, vector<16x48xf32>
    tpu.vector_store %arg17[%c0_70, %c0_71], %74 {strides = array<i32>} : memref<16x48xf32, #tpu.memory_space<vmem>>, vector<16x48xf32>,
    %76 = vector.extract_strided_slice %73 {offsets = [0, 0], sizes = [7, 16], strides = [1, 1]} : vector<16x16xf32> to vector<7x16xf32>
    %c1_72 = arith.constant 1 : index
    %c0_73 = arith.constant 0 : index
    %77 = vector.load %arg17[%c1_72, %c0_73] : memref<16x48xf32, #tpu.memory_space<vmem>>, vector<7x16xf32>
    tpu.vector_store %arg17[%c1_72, %c0_73], %76 {strides = array<i32>} : memref<16x48xf32, #tpu.memory_space<vmem>>, vector<7x16xf32>,
    %78 = vector.extract_strided_slice %73 {offsets = [8, 0], sizes = [7, 16], strides = [1, 1]} : vector<16x16xf32> to vector<7x16xf32>
    %c9_74 = arith.constant 9 : index
    %c0_75 = arith.constant 0 : index
    %79 = vector.load %arg17[%c9_74, %c0_75] : memref<16x48xf32, #tpu.memory_space<vmem>>, vector<7x16xf32>
    tpu.vector_store %arg17[%c9_74, %c0_75], %78 {strides = array<i32>} : memref<16x48xf32, #tpu.memory_space<vmem>>, vector<7x16xf32>,
    %80 = vector.extract_strided_slice %73 {offsets = [0, 0], sizes = [8, 16], strides = [1, 1]} : vector<16x16xf32> to vector<8x16xf32>
    %c0_76 = arith.constant 0 : index
    %c16_77 = arith.constant 16 : index
    %81 = vector.load %arg17[%c0_76, %c16_77] : memref<16x48xf32, #tpu.memory_space<vmem>>, vector<8x16xf32>
    tpu.vector_store %arg17[%c0_76, %c16_77], %80 {strides = array<i32>} : memref<16x48xf32, #tpu.memory_space<vmem>>, vector<8x16xf32>,
    %82 = vector.extract_strided_slice %73 {offsets = [8, 0], sizes = [8, 16], strides = [1, 1]} : vector<16x16xf32> to vector<8x16xf32>
    %c8_78 = arith.constant 8 : index
    %c16_79 = arith.constant 16 : index
    %83 = vector.load %arg17[%c8_78, %c16_79] : memref<16x48xf32, #tpu.memory_space<vmem>>, vector<8x16xf32>
    tpu.vector_store %arg17[%c8_78, %c16_79], %82 {strides = array<i32>} : memref<16x48xf32, #tpu.memory_space<vmem>>, vector<8x16xf32>,
    %84 = vector.extract_strided_slice %73 {offsets = [1, 0], sizes = [7, 16], strides = [1, 1]} : vector<16x16xf32> to vector<7x16xf32>
    %c0_80 = arith.constant 0 : index
    %c32 = arith.constant 32 : index
    %85 = vector.load %arg17[%c0_80, %c32] : memref<16x48xf32, #tpu.memory_space<vmem>>, vector<7x16xf32>
    tpu.vector_store %arg17[%c0_80, %c32], %84 {strides = array<i32>} : memref<16x48xf32, #tpu.memory_space<vmem>>, vector<7x16xf32>,
    %86 = vector.extract_strided_slice %73 {offsets = [9, 0], sizes = [7, 16], strides = [1, 1]} : vector<16x16xf32> to vector<7x16xf32>
    %c8_81 = arith.constant 8 : index
    %c32_82 = arith.constant 32 : index
    %87 = vector.load %arg17[%c8_81, %c32_82] : memref<16x48xf32, #tpu.memory_space<vmem>>, vector<7x16xf32>
    tpu.vector_store %arg17[%c8_81, %c32_82], %86 {strides = array<i32>} : memref<16x48xf32, #tpu.memory_space<vmem>>, vector<7x16xf32>,
    %c0_83 = arith.constant 0 : index
    %c0_84 = arith.constant 0 : index
    %88 = vector.load %arg17[%c0_83, %c0_84] : memref<16x48xf32, #tpu.memory_space<vmem>>, vector<16x48xf32>
    %89 = arith.truncf %88 : vector<16x48xf32> to vector<16x48xbf16>
    %c0_85 = arith.constant 0 : index
    %c0_86 = arith.constant 0 : index
    %90 = vector.load %arg4[%c0_85, %c0_86] : memref<48x16xbf16, #tpu.memory_space<vmem>>, vector<48x16xbf16>
    %cst_87 = arith.constant dense<0.000000e+00> : vector<16x16xf32>
    %91 = tpu.matmul %89, %90, %cst_87 {dimension_numbers = #tpu.dot_dimension_numbers<[1], [0], [0], [1], [0, 0, 1, 1], [], []>} : vector<16x48xbf16>, vector<48x16xbf16>, vector<16x16xf32> -> vector<16x16xf32>
    %c0_88 = arith.constant 0 : index
    %c0_89 = arith.constant 0 : index
    %92 = vector.load %arg8[%c0_88, %c0_89] : memref<1x16xf32, #tpu.memory_space<vmem>>, vector<1x16xf32>
    %93 = vector.broadcast %92 : vector<1x16xf32> to vector<16x16xf32>
    %94 = arith.addf %91, %93 : vector<16x16xf32>
    %cst_90 = arith.constant 0.000000e+00 : f32
    %95 = vector.broadcast %cst_90 : f32 to vector<16x16xf32>
    %96 = arith.maximumf %94, %95 : vector<16x16xf32>
    %c0_91 = arith.constant 0 : index
    %c0_92 = arith.constant 0 : index
    %97 = vector.load %arg19[%c0_91, %c0_92] : memref<16x16xf32, #tpu.memory_space<vmem>>, vector<16x16xf32>
    tpu.vector_store %arg19[%c0_91, %c0_92], %96 {strides = array<i32>} : memref<16x16xf32, #tpu.memory_space<vmem>>, vector<16x16xf32>,
    %c0_93 = arith.constant 0 : index
    %c0_94 = arith.constant 0 : index
    %98 = tpu.strided_load %arg19[%c0_93, %c0_94] {strides = array<i32: 2, 1>} : memref<16x16xf32, #tpu.memory_space<vmem>>, vector<8x16xf32>
    %c1_95 = arith.constant 1 : index
    %c0_96 = arith.constant 0 : index
    %99 = tpu.strided_load %arg19[%c1_95, %c0_96] {strides = array<i32: 2, 1>} : memref<16x16xf32, #tpu.memory_space<vmem>>, vector<8x16xf32>
    %100 = arith.maximumf %98, %99 : vector<8x16xf32>
    %c0_97 = arith.constant 0 : index
    %c0_98 = arith.constant 0 : index
    %101 = vector.load %arg20[%c0_97, %c0_98] : memref<8x16xf32, #tpu.memory_space<vmem>>, vector<8x16xf32>
    tpu.vector_store %arg20[%c0_97, %c0_98], %100 {strides = array<i32>} : memref<8x16xf32, #tpu.memory_space<vmem>>, vector<8x16xf32>,
    %cst_99 = arith.constant 0.000000e+00 : f32
    %102 = vector.broadcast %cst_99 : f32 to vector<2x32xf32>
    %c0_100 = arith.constant 0 : index
    %c0_101 = arith.constant 0 : index
    %103 = tpu.strided_load %arg20[%c0_100, %c0_101] {strides = array<i32: 4, 1>} : memref<8x16xf32, #tpu.memory_space<vmem>>, vector<2x16xf32>
    %104 = arith.truncf %103 : vector<2x16xf32> to vector<2x16xbf16>
    %c0_102 = arith.constant 0 : index
    %c0_103 = arith.constant 0 : index
    %c0_104 = arith.constant 0 : index
    %105 = vector.load %arg9[%c0_102, %c0_103, %c0_104] : memref<4x16x32xbf16, #tpu.memory_space<vmem>>, vector<1x16x32xbf16>
    %106 = vector.shape_cast %105 : vector<1x16x32xbf16> to vector<16x32xbf16>
    %cst_105 = arith.constant dense<0.000000e+00> : vector<2x32xf32>
    %107 = tpu.matmul %104, %106, %cst_105 {dimension_numbers = #tpu.dot_dimension_numbers<[1], [0], [0], [1], [0, 0, 1, 1], [], []>} : vector<2x16xbf16>, vector<16x32xbf16>, vector<2x32xf32> -> vector<2x32xf32>
    %108 = arith.addf %102, %107 : vector<2x32xf32>
    %c1_106 = arith.constant 1 : index
    %c0_107 = arith.constant 0 : index
    %109 = tpu.strided_load %arg20[%c1_106, %c0_107] {strides = array<i32: 4, 1>} : memref<8x16xf32, #tpu.memory_space<vmem>>, vector<2x16xf32>
    %110 = arith.truncf %109 : vector<2x16xf32> to vector<2x16xbf16>
    %c1_108 = arith.constant 1 : index
    %c0_109 = arith.constant 0 : index
    %c0_110 = arith.constant 0 : index
    %111 = vector.load %arg9[%c1_108, %c0_109, %c0_110] : memref<4x16x32xbf16, #tpu.memory_space<vmem>>, vector<1x16x32xbf16>
    %112 = vector.shape_cast %111 : vector<1x16x32xbf16> to vector<16x32xbf16>
    %cst_111 = arith.constant dense<0.000000e+00> : vector<2x32xf32>
    %113 = tpu.matmul %110, %112, %cst_111 {dimension_numbers = #tpu.dot_dimension_numbers<[1], [0], [0], [1], [0, 0, 1, 1], [], []>} : vector<2x16xbf16>, vector<16x32xbf16>, vector<2x32xf32> -> vector<2x32xf32>
    %114 = arith.addf %108, %113 : vector<2x32xf32>
    %c2 = arith.constant 2 : index
    %c0_112 = arith.constant 0 : index
    %115 = tpu.strided_load %arg20[%c2, %c0_112] {strides = array<i32: 4, 1>} : memref<8x16xf32, #tpu.memory_space<vmem>>, vector<2x16xf32>
    %116 = arith.truncf %115 : vector<2x16xf32> to vector<2x16xbf16>
    %c2_113 = arith.constant 2 : index
    %c0_114 = arith.constant 0 : index
    %c0_115 = arith.constant 0 : index
    %117 = vector.load %arg9[%c2_113, %c0_114, %c0_115] : memref<4x16x32xbf16, #tpu.memory_space<vmem>>, vector<1x16x32xbf16>
    %118 = vector.shape_cast %117 : vector<1x16x32xbf16> to vector<16x32xbf16>
    %cst_116 = arith.constant dense<0.000000e+00> : vector<2x32xf32>
    %119 = tpu.matmul %116, %118, %cst_116 {dimension_numbers = #tpu.dot_dimension_numbers<[1], [0], [0], [1], [0, 0, 1, 1], [], []>} : vector<2x16xbf16>, vector<16x32xbf16>, vector<2x32xf32> -> vector<2x32xf32>
    %120 = arith.addf %114, %119 : vector<2x32xf32>
    %c3 = arith.constant 3 : index
    %c0_117 = arith.constant 0 : index
    %121 = tpu.strided_load %arg20[%c3, %c0_117] {strides = array<i32: 4, 1>} : memref<8x16xf32, #tpu.memory_space<vmem>>, vector<2x16xf32>
    %122 = arith.truncf %121 : vector<2x16xf32> to vector<2x16xbf16>
    %c3_118 = arith.constant 3 : index
    %c0_119 = arith.constant 0 : index
    %c0_120 = arith.constant 0 : index
    %123 = vector.load %arg9[%c3_118, %c0_119, %c0_120] : memref<4x16x32xbf16, #tpu.memory_space<vmem>>, vector<1x16x32xbf16>
    %124 = vector.shape_cast %123 : vector<1x16x32xbf16> to vector<16x32xbf16>
    %cst_121 = arith.constant dense<0.000000e+00> : vector<2x32xf32>
    %125 = tpu.matmul %122, %124, %cst_121 {dimension_numbers = #tpu.dot_dimension_numbers<[1], [0], [0], [1], [0, 0, 1, 1], [], []>} : vector<2x16xbf16>, vector<16x32xbf16>, vector<2x32xf32> -> vector<2x32xf32>
    %126 = arith.addf %120, %125 : vector<2x32xf32>
    %c0_122 = arith.constant 0 : index
    %c0_123 = arith.constant 0 : index
    %127 = vector.load %arg11[%c0_122, %c0_123] : memref<1x32xf32, #tpu.memory_space<vmem>>, vector<1x32xf32>
    %128 = vector.broadcast %127 : vector<1x32xf32> to vector<2x32xf32>
    %129 = arith.addf %126, %128 : vector<2x32xf32>
    %cst_124 = arith.constant 0.000000e+00 : f32
    %130 = vector.broadcast %cst_124 : f32 to vector<2x32xf32>
    %131 = arith.maximumf %129, %130 : vector<2x32xf32>
    %132 = arith.truncf %131 : vector<2x32xf32> to vector<2x32xbf16>
    %c0_125 = arith.constant 0 : index
    %c0_126 = arith.constant 0 : index
    %133 = vector.load %arg10[%c0_125, %c0_126] : memref<32x10xbf16, #tpu.memory_space<vmem>>, vector<32x10xbf16>
    %cst_127 = arith.constant dense<0.000000e+00> : vector<2x10xf32>
    %134 = tpu.matmul %132, %133, %cst_127 {dimension_numbers = #tpu.dot_dimension_numbers<[1], [0], [0], [1], [0, 0, 1, 1], [], []>} : vector<2x32xbf16>, vector<32x10xbf16>, vector<2x10xf32> -> vector<2x10xf32>
    %c0_128 = arith.constant 0 : index
    %c0_129 = arith.constant 0 : index
    %135 = vector.load %arg12[%c0_128, %c0_129] : memref<1x10xf32, #tpu.memory_space<vmem>>, vector<1x10xf32>
    %136 = vector.broadcast %135 : vector<1x10xf32> to vector<2x10xf32>
    %137 = arith.addf %134, %136 : vector<2x10xf32>
    %cst_130 = arith.constant 0.000000e+00 : f32
    %138 = vector.broadcast %cst_130 : f32 to vector<2x10xf32>
    %139 = arith.maximumf %137, %138 : vector<2x10xf32>
    %c0_131 = arith.constant 0 : index
    %c0_132 = arith.constant 0 : index
    %140 = vector.load %arg13[%c0_131, %c0_132] : memref<2x10xf32, #tpu.memory_space<vmem>>, vector<2x10xf32>
    tpu.vector_store %arg13[%c0_131, %c0_132], %139 {strides = array<i32>} : memref<2x10xf32, #tpu.memory_space<vmem>>, vector<2x10xf32>,
    return
  }
}

</mosaic_0001>

<bundles_post_ra>
// kernel: _lambda_.1
= control target key start
LH: loop header
LB: loop body
LE: loop exit
PB: predicated region body
PF: predicated region fallthrough
CT: control target
= control target key end

     0   :  { %18 = vsyncpa [#allocation10], 0  ;;  %s1502_s0 = inlined_call_operand.vmem [shape: f32[32,4], index: 0, kind: input, shape index: {}]   ;;  %s1503_s1 = inlined_call_operand.hbm [shape: bf16[12,8], index: 1, kind: input, shape index: {}]   ;;  %s1504_s2 = inlined_call_operand.hbm [shape: bf16[24,8], index: 2, kind: input, shape index: {}]   ;;  %s1505_s3 = inlined_call_operand.hbm [shape: bf16[24,16], index: 3, kind: input, shape index: {}]   ;;  %s1506_s4 = inlined_call_operand.vmem [shape: bf16[48,16], index: 4, kind: input, shape index: {}]   ;;  %s1507_s5 = inlined_call_operand.hbm [shape: f32[1,8], index: 5, kind: input, shape index: {}]   ;;  %s1508_s6 = inlined_call_operand.vmem [shape: f32[1,8], index: 6, kind: input, shape index: {}]   ;;  %s1509_s7 = inlined_call_operand.vmem [shape: f32[1,16], index: 7, kind: input, shape index: {}]   ;;  %s1510_s8 = inlined_call_operand.vmem [shape: f32[1,16], index: 8, kind: input, shape index: {}]   ;;  %s1511_s9 = inlined_call_operand.vmem [shape: bf16[4,16,32], index: 9, kind: input, shape index: {}]   ;;  %s1512_s10 = inlined_call_operand.vmem [shape: bf16[32,10], index: 10, kind: input, shape index: {}]   ;;  %s1513_s11 = inlined_call_operand.vmem [shape: f32[1,32], index: 11, kind: input, shape index: {}]   ;;  %s1514_s12 = inlined_call_operand.vmem [shape: f32[1,10], index: 12, kind: input, shape index: {}]   ;;  %s1515_s13 = inlined_call_operand.hbm [shape: f32[2,10], index: 13, kind: output, shape index: {}]  }
   0x1   :  { %19 = vsyncpa [#allocation13], 0 }
   0x2   :  { %20 = vsyncpa [#allocation16], 0 }
   0x3   :  { %21 = vsyncpa [#allocation11], 0  ;;  %s1183_s25 = smov [#allocation12]   ;;  %s1184_s27 = smov [#allocation9]  }
   0x4   :  { %s41_s26 = sshll.u32 %s1183_s25, 4  ;;  %s29_s28 = sshll.u32 %s1184_s27, 4  ;;  %s42_s26 = int_to_ptr.vmem [resolvable:$true] %s41_s26  ;;  %s1265_s28 = int_to_ptr.vmem [resolvable:$true] %s29_s28 }
   0x5   :  { %s1065_s14 = scalar_lea.hbm %s1504_s2, 192 }
   0x6   :  { %p1066_p0 = scmp.ne.s32.totalorder %s1504_s2, %s1065_s14  ;;  %p1069_p1 = scmp.lt.u32.totalorder %s1065_s14, %s1504_s2 }
   0x8   :  { %p1071_p2 = pnand %p1069_p1, %p1066_p0 }
   0xa   :  { %1074 = shalt.err (!%p1071_p2)
}
   0xb   :  { %s1075_s19 = scalar_lea.vmem %s42_s26, 192  ;;  %p1080_p4 = scmp.lt.s32.totalorder %s42_s26, %s42_s26 }
   0xc   :  { %p1076_p3 = scmp.ne.s32.totalorder %s42_s26, %s1075_s19  ;;  %p1081_p5 = scmp.lt.s32.totalorder %s1075_s19, %s1075_s19 }
   0xe   :  { %p1082_p6 = por %p1081_p5, %p1080_p4 }
  0x10   :  { %p1083_p7 = pnand %p1082_p6, %p1076_p3 }
  0x12   :  { %1086 = shalt.err (!%p1083_p7)
}
  0x13   :  { %s1185_s20 = smov 64   ;;  %s1186_s21 = smov 4  }
  0x14   :  { %47 = dma.hbm_to_vmem [thread:$0]  %s1504_s2, 192, %s42_s26, [#allocation13], %s1185_s20, %s1185_s20, %s1186_s21  }
  0x15   :  { %s1087_s27 = scalar_lea.hbm %s1503_s1, 128 }
  0x16   :  { %p1088_p8 = scmp.ne.s32.totalorder %s1503_s1, %s1087_s27  ;;  %p1091_p9 = scmp.lt.u32.totalorder %s1087_s27, %s1503_s1 }
  0x18   :  { %p1093_p10 = pnand %p1091_p9, %p1088_p8 }
  0x1a   :  { %1096 = shalt.err (!%p1093_p10)
}
  0x1b   :  { %s1097_s16 = scalar_lea.vmem %s1265_s28, 128  ;;  %p1102_p12 = scmp.lt.s32.totalorder %s1265_s28, %s1265_s28 }
  0x1c   :  { %p1098_p11 = scmp.ne.s32.totalorder %s1265_s28, %s1097_s16  ;;  %p1103_p13 = scmp.lt.s32.totalorder %s1097_s16, %s1097_s16 }
  0x1e   :  { %p1104_p0 = por %p1103_p13, %p1102_p12 }
  0x20   :  { %p1105_p1 = pnand %p1104_p0, %p1098_p11 }
  0x22   :  { %1108 = shalt.err (!%p1105_p1)
}
  0x23   :  { %35 = dma.hbm_to_vmem [thread:$0]  %s1503_s1, 128, %s1265_s28, [#allocation10], %s1185_s20, %s1185_s20, %s1186_s21  }
  0x24   :  { %s1187_s17 = smov [#allocation14]   ;;  %s1188_s19 = smov [#allocation15]  }
  0x25   :  { %s53_s18 = sshll.u32 %s1187_s17, 4  ;;  %s68_s22 = sshll.u32 %s1188_s19, 4  ;;  %s54_s18 = int_to_ptr.vmem [resolvable:$true] %s53_s18  ;;  %s69_s22 = int_to_ptr.vmem [resolvable:$true] %s68_s22 }
  0x26   :  { %s1109_s25 = scalar_lea.hbm %s1505_s3, 192 }
  0x27   :  { %p1110_p2 = scmp.ne.s32.totalorder %s1505_s3, %s1109_s25  ;;  %p1113_p3 = scmp.lt.u32.totalorder %s1109_s25, %s1505_s3 }
  0x29   :  { %p1115_p4 = pnand %p1113_p3, %p1110_p2 }
  0x2b   :  { %1118 = shalt.err (!%p1115_p4)
}
  0x2c   :  { %s1119_s1 = scalar_lea.vmem %s54_s18, 192  ;;  %p1124_p6 = scmp.lt.s32.totalorder %s54_s18, %s54_s18 }
  0x2d   :  { %p1120_p5 = scmp.ne.s32.totalorder %s54_s18, %s1119_s1  ;;  %p1125_p7 = scmp.lt.s32.totalorder %s1119_s1, %s1119_s1 }
  0x2f   :  { %p1126_p8 = por %p1125_p7, %p1124_p6 }
  0x31   :  { %p1127_p9 = pnand %p1126_p8, %p1120_p5 }
  0x33   :  { %1130 = shalt.err (!%p1127_p9)
}
  0x34   :  { %59 = dma.hbm_to_vmem [thread:$0]  %s1505_s3, 192, %s54_s18, [#allocation13], %s1185_s20, %s1185_s20, %s1186_s21  }
  0x35   :  { %s1131_s26 = scalar_lea.hbm %s1507_s5, 16 }
  0x36   :  { %p1132_p10 = scmp.ne.s32.totalorder %s1507_s5, %s1131_s26  ;;  %p1135_p11 = scmp.lt.u32.totalorder %s1131_s26, %s1507_s5 }
  0x38   :  { %p1137_p12 = pnand %p1135_p11, %p1132_p10 }
  0x3a   :  { %1140 = shalt.err (!%p1137_p12)
}
  0x3b   :  { %s1141_s25 = scalar_lea.vmem %s69_s22, 16  ;;  %s1145_s27 = scalar_lea.vmem %s69_s22, 32 }
  0x3c   :  { %p1142_p13 = scmp.ne.s32.totalorder %s69_s22, %s1141_s25  ;;  %p1146_p0 = scmp.lt.s32.totalorder %s69_s22, %s69_s22 }
  0x3d   :  { %p1147_p1 = scmp.lt.s32.totalorder %s1145_s27, %s1141_s25 }
  0x3f   :  { %p1148_p2 = por %p1147_p1, %p1146_p0 }
  0x41   :  { %p1149_p3 = pnand %p1148_p2, %p1142_p13 }
  0x43   :  { %1152 = shalt.err (!%p1149_p3)
}
  0x44   :  { %71 = dma.hbm_to_vmem [thread:$0]  %s1507_s5, 16, %s69_s22, [#allocation16]  }
  0x45   :  { %1175 = dma.done.wait [#allocation10], 128  }
  0x46   :  { %1176 = vsyncadd [#allocation10], 4294967168 }
  0x47   :  { %1177 = dma.done.wait [#allocation13], 384  }
  0x48   :  { %1178 = vsyncadd [#allocation13], 4294966912 }
  0x49   :  { %1179 = dma.done.wait [#allocation16], 16  }
  0x4a   :  { %1180 = vsyncadd [#allocation16], 4294967280  ;;  %vm103_vm0 = vcmask 97280   ;;  %v1189_v0 = vmov 0.0   ;;  %vm108_vm1 = vcmask 31744   ;;  %vm110_vm2 = vcmask 30720  }
  0x4b   :  { %106 = vst.msk [vmem:[#allocation2 + $0x10] sm:$0xff] %vm103_vm0, %v1189_v0  ;;  %107 = vst.msk [vmem:[#allocation2 + $0x18] sm:$0xff] %vm103_vm0, %v1189_v0  ;;  %v101_v1 = vld [vmem:[%s1502_s0 + $0x10] sm:$0xff]  ;;  %v99_v2 = vld [vmem:[%s1502_s0] sm:$0xff]  ;;  %vm179_vm3 = vcmask 1045504   ;;  %s1190_s15 = smov 8  }
  0x4c   :  { %104 = vst.msk [vmem:[#allocation2] sm:$0xff] %vm103_vm0, %v1189_v0  ;;  %105 = vst.msk [vmem:[#allocation2 + $0x8] sm:$0xff] %vm103_vm0, %v1189_v0  ;;  %v102_v3 = vld [vmem:[%s1502_s0 + $0x18] sm:$0xff]  ;;  %127 = vrot.lane.b32.xlu1 %v101_v1, %s1186_s21  ;;  %116 = vrot.lane.b32.xlu0 %v99_v2, %s1186_s21  ;;  %v100_v4 = vld [vmem:[%s1502_s0 + $0x8] sm:$0xff]  ;;  %vm122_vm4 = vcmask 64544   ;;  %vm143_vm5 = vcmask 97344  }
  0x4d   :  { %112 = vst.msk [vmem:[#allocation2 + $0x11] sm:$0xff] %vm108_vm1, %v101_v1  ;;  %109 = vst.msk [vmem:[#allocation2 + $0x1] sm:$0xff] %vm108_vm1, %v99_v2  ;;  %v1051_v5 = vld [vmem:[#allocation9] sm:$0x3f]   ;;  %vm141_vm6 = vcmask 97345   ;;  %vm236_vm7 = vcmask 195584  }
  0x4e   :  { %113 = vst.msk [vmem:[#allocation2 + $0x19] sm:$0x7f] %vm110_vm2, %v102_v3  ;;  %111 = vst.msk [vmem:[#allocation2 + $0x9] sm:$0x7f] %vm110_vm2, %v100_v4  ;;  %1037 = vmatprep.subr.msk.bf16.mxu0 %vm179_vm3, %v1051_v5  ;;  %v181_v6 = vsel %vm179_vm3, %v1051_v5, 0  ;;  %vm241_vm8 = vcmask 64512  }
  0x4f   :  { %974 = vmatpush3.bf16.msra.mxu0 %v181_v6  ;;  %240 = vst.msk [vmem:[#allocation3 + $0x18] sm:$0xff] %vm236_vm7, %v1189_v0  ;;  %237 = vst.msk [vmem:[#allocation3] sm:$0xff] %vm236_vm7, %v1189_v0  ;;  %v911_v21 = vld [vmem:[#allocation15] ss:$0 sm:$0xff]  ;;  %vm243_vm9 = vcmask 63488   ;;  %v1052_v34 = vld [vmem:[#allocation12] sm:$0xff]  }
  0x50   :  { %129 = vrot.lane.b32.xlu1 %v102_v3, %s1186_s21  ;;  %118 = vrot.lane.b32.xlu0 %v100_v4, %s1186_s21  ;;  %238 = vst.msk [vmem:[#allocation3 + $0x8] sm:$0xff] %vm236_vm7, %v1189_v0  ;;  %239 = vst.msk [vmem:[#allocation3 + $0x10] sm:$0xff] %vm236_vm7, %v1189_v0  ;;  %v1053_v35 = vld [vmem:[#allocation12 + $0x8] ss:$0 sps:$4 sm:$0xff]   ;;  %vm317_vm10 = vcmask 1043456   ;;  %s1191_s0 = smov 16  }
  0x51   :  { %987 = vmatprep.subr.bf16.mxu0 %v1189_v0  ;;  %387 = vst.msk [vmem:[#allocation4] sm:$0xff] %vm236_vm7, %v1189_v0  ;;  %388 = vst.msk [vmem:[#allocation4 + $0x8] sm:$0xff] %vm236_vm7, %v1189_v0  ;;  %979 = vmatprep.subr.bf16.mxu1 %v1052_v34  ;;  %v319_v36 = vsel %vm317_vm10, %v1053_v35, 0  ;;  %vm255_vm11 = vcmask 130112   ;;  %vm274_vm12 = vcmask 195713   ;;  %vm276_vm13 = vcmask 195712  }
  0x52   :  { %980 = vmatpush3.bf16.msra.mxu1 %v1052_v34  ;;  %v915_v51 = vld [vmem:[%s1508_s6] ss:$0 sm:$0xff]  ;;  %vm1192_vm14 = vmmov 0   ;;  %vm480_vm15 = vcmask 392192   ;;  %vm490_vm1 = vcmask 261248   ;;  %vm500_vm2 = vcmask 392449  }
  0x53   :  { %1038 = vmatprep.subr.msk.bf16.mxu1 %vm317_vm10, %v1053_v35  ;;  %481 = vst.msk [vmem:[#allocation5] sm:$0xff] %vm480_vm15, %v1189_v0  ;;  %482 = vst.msk [vmem:[#allocation5 + $0x8] sm:$0xff] %vm480_vm15, %v1189_v0  ;;  %vm586_vm3 = vcmask 130048   ;;  %s1194_s16 = smov [#allocation17]  }
  0x54   :  { %137 = vrot.lane.b32.xlu1 %v100_v4, %s1190_s15  ;;  %135 = vrot.lane.b32.xlu0 %v99_v2, %s1190_s15  ;;  %v1055_v2 = vld [vmem:[#allocation14 + $0x8] ss:$0 sps:$4 sm:$0xff]   ;;  %s900_s6 = sshll.u32 %s1194_s16, 4  ;;  %s901_s6 = int_to_ptr.vmem [resolvable:$true] %s900_s6 }
  0x55   :  { %p1158_p5 = scmp.lt.s32.totalorder %s901_s6, %s901_s6 }
  0x56   :  { %982 = vmatpush3.bf16.msra.mxu1 %v319_v36  ;;  %v1059_v36 = vld [vmem:[%s1511_s9 + $0x8] sm:$0xff]  }
  0x57   :  { %995 = vmatprep.subr.bf16.mxu1 %v1189_v0 }
  0x58   :  { %147 = vrot.lane.b32.xlu1 %v102_v3, %s1190_s15  ;;  %145 = vrot.lane.b32.xlu0 %v101_v1, %s1190_s15  ;;  %v1054_v1 = vld [vmem:[#allocation14] sm:$0xff]   ;;  %v435_v3 = vsel %vm317_vm10, %v1055_v2, 0 }
  0xbe   :  { %v128_v7 = vpop.permute.xlu1 %127  ;;  %v117_v8 = vpop.permute.xlu0 %116 }
  0xbf   :  { %133 = vst.msk [vmem:[#allocation2 + $0x10] sm:$0xff] %vm122_vm4, %v128_v7  ;;  %123 = vst.msk [vmem:[#allocation2] sm:$0xff] %vm122_vm4, %v117_v8 }
  0xc2   :  { %v130_v9 = vpop.permute.xlu1 %129  ;;  %v119_v10 = vpop.permute.xlu0 %118 }
  0xc3   :  { %134 = vst.msk [vmem:[#allocation2 + $0x18] sm:$0xff] %vm122_vm4, %v130_v9  ;;  %124 = vst.msk [vmem:[#allocation2 + $0x8] sm:$0xff] %vm122_vm4, %v119_v10  ;;  %vm847_vm4 = vcmask 261120  }
  0xc6   :  { %v138_v11 = vpop.permute.xlu1 %137  ;;  %v136_v12 = vpop.permute.xlu0 %135 }
  0xc7   :  { %144 = vst.msk [vmem:[#allocation2 + $0x7] sm:$0xff] %vm143_vm5, %v138_v11 }
  0xc8   :  { %142 = vst.msk [vmem:[#allocation2 - $0x1] sm:$0xfe] %vm141_vm6, %v136_v12 }
  0xca   :  { %v148_v13 = vpop.permute.xlu1 %147  ;;  %v146_v14 = vpop.permute.xlu0 %145 }
  0xcb   :  { %152 = vst.msk [vmem:[#allocation2 + $0x17] sm:$0xff] %vm143_vm5, %v148_v13  ;;  %vm892_vm5 = vcmask 74752  }
  0xcc   :  { %151 = vst.msk [vmem:[#allocation2 + $0xf] sm:$0xfe] %vm141_vm6, %v146_v14 }
  0xce   :  { %v154_v16 = vld [vmem:[#allocation2 + $0x8] sm:$0xff] }
  0xcf   :  { %v153_v15 = vld [vmem:[#allocation2] sm:$0xff] }
  0xd0   :  { %v157_v17 = vpack.c.bf16 %v154_v16, %v153_v15 }
  0xd2   :  { %975 = vmatprep.mubr.msk.bf16.mxu0 %vm103_vm0, %v157_v17  ;;  %v156_v19 = vld [vmem:[#allocation2 + $0x18] sm:$0xff]  ;;  %v1056_v17 = vld [vmem:[%s1506_s4] sm:$0xff]  }
  0xd3   :  { %v155_v18 = vld [vmem:[#allocation2 + $0x10] sm:$0xff] }
  0xd4   :  { %v158_v20 = vpack.c.bf16 %v156_v19, %v155_v18  ;;  %v920_v18 = vld [vmem:[%s1509_s7] ss:$0 sm:$0xff]  ;;  %v1057_v19 = vld [vmem:[%s1506_s4 + $0x8] sm:$0xff]   ;;  %s1193_s7 = smov 32  }
  0xd6   :  { %976 = vmatmul.mubr.msk.bf16.vlgmr.msra.gmra.mrb[0].mxu0 %vm103_vm0, %v158_v20  ;;  %vm483_vm0 = vcmask 129024  }
  0xd7   :  { %991 = vmatprep.mubr.msk.bf16.mxu0 %vm1192_vm14, %v1189_v0  ;;  %988 = vmatpush3.bf16.msra.mxu0 %v1054_v1 }
  0xd8   :  { %989 = vmatprep.subr.bf16.mxu0 %v1189_v0 }
  0xdb   :  { %990 = vmatpush3.bf16.msra.mxu0 %v435_v3 }
  0xdc   :  { %1005 = vmatprep.subr.bf16.mxu0 %v1189_v0 }
 0x1a9   :  { %v977_v22 = vpop.f32.mrb[0].mxu0 }
 0x1aa   :  { %v226_v23 = vadd.f32 %v977_v22, %v911_v21  ;;  %v217_v24 = vpop.f32.mrb[1].mxu0 }
 0x1ab   :  { %v218_v25 = vadd.f32 %v911_v21, %v217_v24  ;;  %v978_v26 = vpop.f32.mrb[2].mxu0 }
 0x1ac   :  { %v234_v27 = vmax.f32 %v226_v23, 0.0  ;;  %v229_v28 = vadd.f32 %v978_v26, %v911_v21  ;;  %v220_v29 = vpop.f32.mrb[3].mxu0  ;;  %v1058_v23 = vld [vmem:[%s1506_s4 + $0x10] sm:$0xff]  }
 0x1ad   :  { %v232_v30 = vmax.f32 %v218_v25, 0.0  ;;  %v221_v31 = vadd.f32 %v911_v21, %v220_v29 }
 0x1ae   :  { %v235_v32 = vmax.f32 %v229_v28, 0.0  ;;  %260 = vrot.lane.b32.xlu0 %v234_v27, %s1190_s15  ;;  %245 = vst.msk [vmem:[#allocation3 + $0x11] sm:$0xff] %vm241_vm8, %v234_v27 }
 0x1af   :  { %v233_v33 = vmax.f32 %v221_v31, 0.0  ;;  %242 = vst.msk [vmem:[#allocation3 + $0x1] sm:$0xff] %vm241_vm8, %v232_v30 }
 0x1b0   :  { %246 = vst.msk [vmem:[#allocation3 + $0x19] sm:$0x7f] %vm243_vm9, %v235_v32  ;;  %262 = vrot.lane.b32.xlu1 %v235_v32, %s1190_s15 }
 0x1b1   :  { %244 = vst.msk [vmem:[#allocation3 + $0x9] sm:$0x7f] %vm243_vm9, %v233_v33 }
 0x1b2   :  { %249 = vrot.lane.b32.xlu0 %v232_v30, %s1190_s15 }
 0x1b4   :  { %251 = vrot.lane.b32.xlu1 %v233_v33, %s1190_s15 }
 0x1b6   :  { %268 = vrot.lane.b32.xlu0 %v232_v30, %s1191_s0 }
 0x1b8   :  { %270 = vrot.lane.b32.xlu1 %v233_v33, %s1191_s0 }
 0x1ba   :  { %278 = vrot.lane.b32.xlu0 %v234_v27, %s1191_s0 }
 0x1bc   :  { %280 = vrot.lane.b32.xlu1 %v235_v32, %s1191_s0 }
 0x220   :  { %v261_v37 = vpop.permute.xlu0 %260 }
 0x221   :  { %266 = vst.msk [vmem:[#allocation3 + $0x10] sm:$0xff] %vm255_vm11, %v261_v37  ;;  %v1060_v37 = vld [vmem:[%s1511_s9 + $0x10] sm:$0xff]  }
 0x222   :  { %v263_v38 = vpop.permute.xlu1 %262 }
 0x223   :  { %267 = vst.msk [vmem:[#allocation3 + $0x18] sm:$0xff] %vm255_vm11, %v263_v38  ;;  %v924_v38 = vld [vmem:[%s1510_s8] ss:$0 sm:$0xff] }
 0x224   :  { %v250_v39 = vpop.permute.xlu0 %249 }
 0x225   :  { %256 = vst.msk [vmem:[#allocation3] sm:$0xff] %vm255_vm11, %v250_v39 }
 0x226   :  { %v252_v40 = vpop.permute.xlu1 %251 }
 0x227   :  { %257 = vst.msk [vmem:[#allocation3 + $0x8] sm:$0xff] %vm255_vm11, %v252_v40 }
 0x228   :  { %v269_v41 = vpop.permute.xlu0 %268 }
 0x229   :  { %275 = vst.msk [vmem:[#allocation3 - $0x1] sm:$0xfe] %vm274_vm12, %v269_v41 }
 0x22a   :  { %v271_v42 = vpop.permute.xlu1 %270 }
 0x22b   :  { %277 = vst.msk [vmem:[#allocation3 + $0x7] sm:$0xff] %vm276_vm13, %v271_v42 }
 0x22c   :  { %v279_v43 = vpop.permute.xlu0 %278 }
 0x22d   :  { %284 = vst.msk [vmem:[#allocation3 + $0xf] sm:$0xfe] %vm274_vm12, %v279_v43 }
 0x22e   :  { %v281_v44 = vpop.permute.xlu1 %280 }
 0x22f   :  { %285 = vst.msk [vmem:[#allocation3 + $0x17] sm:$0xff] %vm276_vm13, %v281_v44 }
 0x232   :  { %v286_v45 = vld [vmem:[#allocation3] sm:$0xff]  ;;  %v287_v46 = vld [vmem:[#allocation3 + $0x8] sm:$0xff] }
 0x233   :  { %v290_v47 = vpack.c.bf16 %v287_v46, %v286_v45 }
 0x235   :  { %983 = vmatprep.mubr.msk.bf16.mxu1 %vm236_vm7, %v290_v47 }
 0x236   :  { %v288_v48 = vld [vmem:[#allocation3 + $0x10] sm:$0xff]  ;;  %v289_v49 = vld [vmem:[#allocation3 + $0x18] sm:$0xff] }
 0x237   :  { %v291_v50 = vpack.c.bf16 %v289_v49, %v288_v48 }
 0x239   :  { %984 = vmatmul.mubr.msk.bf16.vlgmr.msra.gmra.mrb[0].mxu1 %vm236_vm7, %v291_v50  ;;  %v1061_v50 = vld [vmem:[%s1511_s9] sm:$0xff]  }
 0x23a   :  { %1001 = vmatprep.mubr.msk.bf16.mxu1 %vm1192_vm14, %v1189_v0  ;;  %996 = vmatpush3.bf16.msra.mxu1 %v1056_v17 }
 0x23b   :  { %997 = vmatprep.subr.bf16.mxu1 %v1189_v0 }
 0x23e   :  { %998 = vmatpush3.bf16.msra.mxu1 %v1057_v19 }
 0x23f   :  { %999 = vmatprep.subr.bf16.mxu1 %v1189_v0 }
 0x242   :  { %1000 = vmatpush3.bf16.msra.mxu1 %v1058_v23 }
 0x243   :  { %1017 = vmatprep.subr.bf16.mxu1 %v1189_v0 }
 0x30c   :  { %v985_v52 = vpop.f32.mrb[0].mxu1 }
 0x30d   :  { %v364_v53 = vadd.f32 %v985_v52, %v915_v51  ;;  %v355_v54 = vpop.f32.mrb[1].mxu1 }
 0x30e   :  { %v356_v55 = vadd.f32 %v915_v51, %v355_v54  ;;  %v986_v56 = vpop.f32.mrb[2].mxu1 }
 0x30f   :  { %v372_v57 = vmax.f32 %v364_v53, 0.0  ;;  %v367_v58 = vadd.f32 %v986_v56, %v915_v51  ;;  %v358_v59 = vpop.f32.mrb[3].mxu1  ;;  %v1062_v56 = vld [vmem:[%s1511_s9 + $0x18] sm:$0xff]  }
 0x310   :  { %v370_v60 = vmax.f32 %v356_v55, 0.0  ;;  %v359_v61 = vadd.f32 %v915_v51, %v358_v59 }
 0x311   :  { %376 = vst.msk [vmem:[#allocation6 + $0x10] sm:$0xff] %vm241_vm8, %v372_v57  ;;  %v373_v62 = vmax.f32 %v367_v58, 0.0 }
 0x312   :  { %374 = vst.msk [vmem:[#allocation6] sm:$0xff] %vm241_vm8, %v370_v60  ;;  %v371_v63 = vmax.f32 %v359_v61, 0.0  ;;  %v1063_v60 = vld [vmem:[%s1512_s10] sm:$0xff]   ;;  %v1064_v61 = vld [vmem:[%s1512_s10 + $0x8] sm:$0xff]  }
 0x313   :  { %377 = vst.msk [vmem:[#allocation6 + $0x18] sm:$0xff] %vm241_vm8, %v373_v62 }
 0x314   :  { %375 = vst.msk [vmem:[#allocation6 + $0x8] sm:$0xff] %vm241_vm8, %v371_v63 }
 0x31a   :  { %v380_v4 = vld [vmem:[#allocation6 + $0x10] ss:$2 sm:$0xff]  ;;  %v384_v5 = vld [vmem:[#allocation6 + $0x11] ss:$2 sm:$0xff] }
 0x31b   :  { %v386_v6 = vmax.f32 %v380_v4, %v384_v5  ;;  %v378_v7 = vld [vmem:[#allocation6] ss:$2 sm:$0xff]  ;;  %v382_v8 = vld [vmem:[#allocation6 + $0x1] ss:$2 sm:$0xff] }
 0x31c   :  { %v385_v9 = vmax.f32 %v378_v7, %v382_v8 }
 0x31d   :  { %397 = vrot.lane.b32.xlu1 %v386_v6, %s1190_s15  ;;  %390 = vst.msk [vmem:[#allocation4 + $0x9] sm:$0x7f] %vm243_vm9, %v386_v6 }
 0x31e   :  { %392 = vrot.lane.b32.xlu0 %v385_v9, %s1190_s15  ;;  %389 = vst.msk [vmem:[#allocation4 + $0x1] sm:$0x7f] %vm243_vm9, %v385_v9 }
 0x321   :  { %405 = vrot.lane.b32.xlu1 %v386_v6, %s1191_s0 }
 0x322   :  { %401 = vrot.lane.b32.xlu0 %v385_v9, %s1191_s0 }
 0x38f   :  { %v398_v10 = vpop.permute.xlu1 %397 }
 0x390   :  { %400 = vst.msk [vmem:[#allocation4 + $0x8] sm:$0xff] %vm255_vm11, %v398_v10  ;;  %v393_v11 = vpop.permute.xlu0 %392 }
 0x391   :  { %395 = vst.msk [vmem:[#allocation4] sm:$0xff] %vm255_vm11, %v393_v11 }
 0x393   :  { %v406_v12 = vpop.permute.xlu1 %405 }
 0x394   :  { %408 = vst.msk [vmem:[#allocation4 + $0x7] sm:$0xfe] %vm274_vm12, %v406_v12  ;;  %v402_v13 = vpop.permute.xlu0 %401 }
 0x395   :  { %404 = vst.msk [vmem:[#allocation4 - $0x1] sm:$0xfe] %vm274_vm12, %v402_v13  ;;  %v943_v13 = vld [vmem:[%s1513_s11] ss:$0 sm:$0xff]  ;;  %s1153_s11 = scalar_lea.vmem %s901_s6, 32 }
 0x396   :  { %p1154_p4 = scmp.ne.s32.totalorder %s901_s6, %s1153_s11  ;;  %p1159_p6 = scmp.lt.s32.totalorder %s1153_s11, %s1153_s11 }
 0x398   :  { %p1160_p7 = por %p1159_p6, %p1158_p5 }
 0x39a   :  { %p1161_p8 = pnand %p1160_p7, %p1154_p4 }
 0x39b   :  { %v410_v14 = vld [vmem:[#allocation4 + $0x8] sm:$0xff] }
 0x39c   :  { %v409_v15 = vld [vmem:[#allocation4] sm:$0xff] }
 0x39d   :  { %v411_v16 = vpack.c.bf16 %v410_v14, %v409_v15 }
 0x39f   :  { %992 = vmatmul.mubr.msk.bf16.vlgmr.msra.gmra.mrb[4].mxu0 %vm236_vm7, %v411_v16 }
 0x3a0   :  { %1007 = vmatprep.mubr.msk.bf16.mxu0 %vm1192_vm14, %v1189_v0  ;;  %1006 = vmatpush3.bf16.msra.mxu0 %v1059_v36 }
 0x3a1   :  { %1011 = vmatprep.subr.bf16.mxu0 %v1189_v0 }
 0x472   :  { %v471_v20 = vpop.f32.mrb[4].mxu0 }
 0x473   :  { %v472_v21 = vadd.f32 %v920_v18, %v471_v20  ;;  %v993_v22 = vpop.f32.mrb[5].mxu0 }
 0x474   :  { %v474_v24 = vpop.f32.mrb[6].mxu0 }
 0x475   :  { %v478_v25 = vmax.f32 %v472_v21, 0.0  ;;  %v475_v26 = vadd.f32 %v920_v18, %v474_v24  ;;  %v994_v27 = vpop.f32.mrb[7].mxu0  ;;  %v944_v21 = vld [vmem:[%s1514_s12] ss:$0 sm:$0xff] }
 0x477   :  { %v479_v28 = vmax.f32 %v475_v26, 0.0  ;;  %487 = vrot.lane.b32.xlu0 %v478_v25, %s1191_s0  ;;  %484 = vst.msk [vmem:[#allocation5 + $0x1] sm:$0x7f] %vm483_vm0, %v478_v25 }
 0x479   :  { %493 = vrot.lane.b32.xlu1 %v479_v28, %s1191_s0  ;;  %485 = vst.msk [vmem:[#allocation5 + $0x9] sm:$0x7f] %vm483_vm0, %v479_v28 }
 0x47b   :  { %497 = vrot.lane.b32.xlu0 %v478_v25, %s1193_s7 }
 0x47d   :  { %502 = vrot.lane.b32.xlu1 %v479_v28, %s1193_s7 }
 0x4e9   :  { %v488_v29 = vpop.permute.xlu0 %487 }
 0x4ea   :  { %491 = vst.msk [vmem:[#allocation5] sm:$0xff] %vm490_vm1, %v488_v29 }
 0x4eb   :  { %v494_v30 = vpop.permute.xlu1 %493 }
 0x4ec   :  { %496 = vst.msk [vmem:[#allocation5 + $0x8] sm:$0xff] %vm490_vm1, %v494_v30 }
 0x4ed   :  { %v498_v31 = vpop.permute.xlu0 %497 }
 0x4ee   :  { %501 = vst.msk [vmem:[#allocation5 - $0x1] sm:$0xfe] %vm500_vm2, %v498_v31 }
 0x4ef   :  { %v503_v32 = vpop.permute.xlu1 %502 }
 0x4f0   :  { %505 = vst.msk [vmem:[#allocation5 + $0x7] sm:$0xfe] %vm500_vm2, %v503_v32 }
 0x4f5   :  { %v506_v33 = vld [vmem:[#allocation5] sm:$0xff] }
 0x4f7   :  { %v507_v34 = vld [vmem:[#allocation5 + $0x8] sm:$0xff] }
 0x4f8   :  { %v508_v35 = vpack.c.bf16 %v507_v34, %v506_v33 }
 0x4fa   :  { %1002 = vmatmul.mubr.msk.bf16.vlgmr.msra.gmra.mrb[4].mxu1 %vm480_vm15, %v508_v35 }
 0x4fb   :  { %1019 = vmatprep.mubr.msk.bf16.mxu1 %vm1192_vm14, %v1189_v0  ;;  %1018 = vmatpush3.bf16.msra.mxu1 %v1060_v37 }
 0x4fc   :  { %1029 = vmatprep.subr.bf16.mxu1 %v1189_v0 }
 0x5cd   :  { %v577_v39 = vpop.f32.mrb[4].mxu1 }
 0x5ce   :  { %v578_v40 = vadd.f32 %v924_v38, %v577_v39  ;;  %v1003_v41 = vpop.f32.mrb[5].mxu1 }
 0x5cf   :  { %v580_v42 = vpop.f32.mrb[6].mxu1 }
 0x5d0   :  { %v584_v43 = vmax.f32 %v578_v40, 0.0  ;;  %v581_v44 = vadd.f32 %v924_v38, %v580_v42  ;;  %v1004_v45 = vpop.f32.mrb[7].mxu1 }
 0x5d2   :  { %587 = vst.msk [vmem:[#allocation7] sm:$0xff] %vm586_vm3, %v584_v43  ;;  %v585_v46 = vmax.f32 %v581_v44, 0.0 }
 0x5d4   :  { %588 = vst.msk [vmem:[#allocation7 + $0x8] sm:$0xff] %vm586_vm3, %v585_v46 }
 0x5db   :  { %v589_v47 = vld [vmem:[#allocation7] ss:$2 sm:$0xff]  ;;  %v591_v48 = vld [vmem:[#allocation7 + $0x1] ss:$2 sm:$0xff] }
 0x5dc   :  { %v592_v49 = vmax.f32 %v589_v47, %v591_v48 }
 0x5de   :  { %593 = vst.msk [vmem:[#allocation8] sm:$0xff] %vm586_vm3, %v592_v49 }
 0x5e5   :  { %v599_v51 = vld [vmem:[#allocation8 + $0x1] ss:$4 sm:$0x3]  ;;  %v703_v52 = vld [vmem:[#allocation8 + $0x2] ss:$4 sm:$0x3] }
 0x5e6   :  { %v600_v53 = vpack.c.bf16 %v599_v51, %v599_v51  ;;  %v704_v54 = vpack.c.bf16 %v703_v52, %v703_v52  ;;  %v594_v55 = vld [vmem:[#allocation8] ss:$4 sm:$0x3]  ;;  %v759_v58 = vld [vmem:[#allocation8 + $0x3] ss:$4 sm:$0x3] }
 0x5e7   :  { %v595_v57 = vpack.c.bf16 %v594_v55, %v594_v55  ;;  %v760_v59 = vpack.c.bf16 %v759_v58, %v759_v58 }
 0x5e8   :  { %1008 = vmatmul.mubr.msk.bf16.vlgmr.msra.gmra.mrb[8].mxu0 %vm586_vm3, %v600_v53  ;;  %1020 = vmatmul.mubr.msk.bf16.vlgmr.msra.gmra.mrb[8].mxu1 %vm586_vm3, %v704_v54 }
 0x5e9   :  { %1012 = vmatpush3.bf16.msra.mxu0 %v1061_v50  ;;  %1013 = vmatprep.mubr.msk.bf16.mxu0 %vm1192_vm14, %v1189_v0 }
 0x5ea   :  { %1023 = vmatprep.subr.bf16.mxu0 %v1189_v0  ;;  %1033 = vmatprep.mubr.msk.bf16.mxu1 %vm1192_vm14, %v1189_v0 }
 0x5eb   :  { %1030 = vmatpush3.bf16.msra.mxu1 %v1063_v60 }
 0x5ec   :  { %1031 = vmatprep.subr.bf16.mxu1 %v1189_v0 }
 0x5ef   :  { %1032 = vmatpush3.bf16.msra.mxu1 %v1064_v61 }
 0x5f0   :  { %1014 = vmatmul.mubr.msk.bf16.vlgmr.msra.gmra.mrb[12].mxu0 %vm586_vm3, %v595_v57 }
 0x5f1   :  { %1024 = vmatpush3.bf16.msra.mxu0 %v1062_v56  ;;  %1025 = vmatprep.mubr.msk.bf16.mxu0 %vm1192_vm14, %v1189_v0 }
 0x5f8   :  { %1026 = vmatmul.mubr.msk.bf16.vlgmr.msra.gmra.mrb[16].mxu0 %vm586_vm3, %v760_v59 }
 0x6bb   :  { %v647_v62 = vpop.f32.mrb[8].mxu0  ;;  %v751_v63 = vpop.f32.mrb[8].mxu1 }
 0x6bc   :  { %v1009_v1 = vpop.f32.mrb[9].mxu0  ;;  %v1021_v2 = vpop.f32.mrb[9].mxu1 }
 0x6bd   :  { %v650_v3 = vpop.f32.mrb[10].mxu0  ;;  %v754_v4 = vpop.f32.mrb[10].mxu1 }
 0x6be   :  { %v1010_v5 = vpop.f32.mrb[11].mxu0  ;;  %v1022_v6 = vpop.f32.mrb[11].mxu1 }
 0x6c3   :  { %v696_v7 = vpop.f32.mrb[12].mxu0 }
 0x6c4   :  { %v697_v8 = vadd.f32 %v696_v7, %v647_v62  ;;  %v1015_v9 = vpop.f32.mrb[13].mxu0 }
 0x6c5   :  { %v699_v10 = vpop.f32.mrb[14].mxu0 }
 0x6c6   :  { %v1016_v11 = vpop.f32.mrb[15].mxu0  ;;  %v757_v12 = vadd.f32 %v751_v63, %v697_v8 }
 0x6cb   :  { %v807_v0 = vpop.f32.mrb[16].mxu0 }
 0x6cc   :  { %v813_v14 = vadd.f32 %v807_v0, %v757_v12  ;;  %v1027_v15 = vpop.f32.mrb[17].mxu0 }
 0x6cd   :  { %v810_v16 = vpop.f32.mrb[18].mxu0 }
 0x6ce   :  { %v821_v17 = vadd.f32 %v943_v13, %v813_v14  ;;  %v1028_v18 = vpop.f32.mrb[19].mxu0 }
 0x6d0   :  { %v822_v19 = vmax.f32 %v821_v17, 0.0 }
 0x6d2   :  { %v823_v20 = vpack.c.bf16 %v822_v19, %v822_v19 }
 0x6d4   :  { %1034 = vmatmul.mubr.msk.bf16.vlgmr.msra.gmra.mrb[12].mxu1 %vm847_vm4, %v823_v20 }
 0x7a7   :  { %v885_v22 = vpop.f32.mrb[12].mxu1 }
 0x7a8   :  { %v886_v23 = vadd.f32 %v944_v21, %v885_v22  ;;  %v1035_v24 = vpop.f32.mrb[13].mxu1 }
 0x7a9   :  { %v888_v25 = vpop.f32.mrb[14].mxu1 }
 0x7aa   :  { %v891_v26 = vmax.f32 %v886_v23, 0.0  ;;  %v1036_v27 = vpop.f32.mrb[15].mxu1 }
 0x7ac   :  { %893 = vst.msk [vmem:[#allocation17] sm:$0x3] %vm892_vm5, %v891_v26 }
 0x7ad   :  { %1164 = shalt.err (!%p1161_p8)
}
 0x7ae   :  { %s1165_s26 = scalar_lea.hbm %s1515_s13, 32 }
 0x7af   :  { %p1166_p9 = scmp.ne.s32.totalorder %s1515_s13, %s1165_s26  ;;  %p1169_p10 = scmp.lt.u32.totalorder %s1165_s26, %s1515_s13 }
 0x7b1   :  { %p1171_p11 = pnand %p1169_p10, %p1166_p9 }
 0x7b3   :  { %1174 = shalt.err (!%p1171_p11)
}
 0x7b4   :  { %903 = dma.vmem_to_hbm [thread:$0]  %s901_s6, 32, %s1515_s13, [#allocation11]  }
 0x7b5   :  { %1181 = dma.done.wait [#allocation11], 32  }
 0x7b6   :  { %1182 = vsyncadd [#allocation11], 4294967264 }
 0x7b7   :  { %907 = vsyncpa [#allocation10], 1 }
 0x7b8   :  { %908 = vsyncpa [#allocation13], 1 }
 0x7b9   :  { %909 = vsyncpa [#allocation16], 1 }
 0x7ba   :  { %910 = vsyncpa [#allocation11], 1 }

</bundles_post_ra>
